<compile_context>
chip_gen: v7x
topology: tpu7x:2x2x1
jax: 0.10.0
libtpu: 0.0.40
codegen_flags: <defaults>
</compile_context>

<pallas_src>
import jax
import jax.numpy as jnp
from jax.experimental import pallas as pl
from jax.experimental.pallas import tpu as pltpu

LN_EPS = 1e-5  # PyTorch nn.LayerNorm default

# Set to jnp.bfloat16 on v5e/v6e/v7x when the workload is MXU/DMA-bound
# (accumulation stays f32 via preferred_element_type; loosen the self-test
# tolerance to ~1e-2 if you flip this).
MATMUL_DTYPE = jnp.float32

MAX_TILE_B = 256  # batch tile; sized for v7x's 64 MiB VMEM with double-buffering


# ----------------------------- kernel helpers ------------------------------
def _mm(a, b):
    return jnp.dot(a.astype(MATMUL_DTYPE), b.astype(MATMUL_DTYPE),
                   preferred_element_type=jnp.float32)


def _ln_tanh(x, gamma, beta):
    mu = jnp.mean(x, axis=-1, keepdims=True)
    var = jnp.mean((x - mu) ** 2, axis=-1, keepdims=True)
    xn = (x - mu) * jax.lax.rsqrt(var + LN_EPS)
    return jnp.tanh(xn * gamma + beta)


# ------------------------------- kernels ------------------------------------
def critic_states_kernel(obs_ref, act_ref, w_obs_ref, w_act_ref,
                         qw1_ref, qw2_ref, bias_ref, out_ref):
    H = w_obs_ref.shape[1]        # trunk width (= hidden_dim)
    H2 = qw1_ref.shape[1]         # 2 * hidden_dim (fused Q1|Q2)
    trunk_b = bias_ref[0:1, :H]
    ln_g = bias_ref[1:2, :H]
    ln_b = bias_ref[2:3, :H]
    qb1 = bias_ref[3:4, :H2]
    qb2 = bias_ref[4:5, :2]

    # trunk: cat([obs, act]) @ W  ==  obs @ W_obs + act @ W_act  (no concat DMA)
    h = _mm(obs_ref[...], w_obs_ref[...]) + _mm(act_ref[...], w_act_ref[...]) + trunk_b
    h = _ln_tanh(h, ln_g, ln_b)

    # fused heads: W1 = [q1_w1 | q2_w1]  (H, 2H);  W2 = blockdiag(q1_w2, q2_w2) (2H, 2)
    z = jnp.maximum(_mm(h, qw1_ref[...]) + qb1, 0.0)
    out_ref[...] = (_mm(z, qw2_ref[...]) + qb2).astype(out_ref.dtype)


def critic_pixels_kernel(obs_ref, act_ref, wt_ref, qwf_ref, qwa_ref,
                         qw2_ref, qw3_ref, bias_ref, out_ref):
    F = wt_ref.shape[1]           # feature_dim
    H2 = qwf_ref.shape[1]         # 2 * hidden_dim (fused Q1|Q2)
    trunk_b = bias_ref[0:1, :F]
    ln_g = bias_ref[1:2, :F]
    ln_b = bias_ref[2:3, :F]
    qb1 = bias_ref[3:4, :H2]
    qb2 = bias_ref[4:5, :H2]
    qb3 = bias_ref[5:6, :2]

    h = _mm(obs_ref[...], wt_ref[...]) + trunk_b
    h = _ln_tanh(h, ln_g, ln_b)

    # cat([h, act]) @ W1 == h @ W1[:F] + act @ W1[F:]  (both heads fused on the output axis)
    z = jnp.maximum(_mm(h, qwf_ref[...]) + _mm(act_ref[...], qwa_ref[...]) + qb1, 0.0)
    z = jnp.maximum(_mm(z, qw2_ref[...]) + qb2, 0.0)   # blockdiag(q1_w2, q2_w2)
    out_ref[...] = (_mm(z, qw3_ref[...]) + qb3).astype(out_ref.dtype)


# ------------------------------ pallas wrappers ------------------------------
def _critic_pallas(kernel, obs, action, weights, bias_slab):
    B = obs.shape[0]
    TB = B if B <= MAX_TILE_B else MAX_TILE_B  # full-array block (always legal) or 8-aligned tile
    grid = (pl.cdiv(B, TB),)

    def tiled(feat):
        return pl.BlockSpec((TB, feat), lambda i: (i, 0))

    def resident(a):  # whole array, same block every grid step -> stays in VMEM
        return pl.BlockSpec(a.shape, lambda i: (0, 0))

    in_specs = ([tiled(obs.shape[1]), tiled(action.shape[1])]
                + [resident(w) for w in weights]
                + [resident(bias_slab)])

    out = pl.pallas_call(
        kernel,
        out_shape=jax.ShapeDtypeStruct((B, 2), jnp.float32),
        grid=grid,
        in_specs=in_specs,
        out_specs=pl.BlockSpec((TB, 2), lambda i: (i, 0)),
        compiler_params=pltpu.CompilerParams(
            dimension_semantics=("parallel",)),  # megacore-shardable on v7x
    )(obs, action, *weights, bias_slab)
    return out[:, 0:1], out[:, 1:2]


def critic_forward_states(obs, action, fused):
    weights = (fused["w_obs"], fused["w_act"], fused["qw1"], fused["qw2"])
    return _critic_pallas(critic_states_kernel, obs, action, weights, fused["bias"])


def critic_forward_pixels(obs, action, fused):
    weights = (fused["wt"], fused["qwf"], fused["qwa"], fused["qw2"], fused["qw3"])
    return _critic_pallas(critic_pixels_kernel, obs, action, weights, fused["bias"])


# ------------------------- parameter init / fusion ---------------------------
def _ortho(key, in_dim, out_dim):
    # weight_init(): nn.init.orthogonal_ on Linear weights (gain=1), bias=0.
    return jax.nn.initializers.orthogonal()(key, (in_dim, out_dim), jnp.float32)


def init_params(key, obs_type, obs_dim, action_dim, feature_dim, hidden_dim):
    """Per-head (PyTorch-equivalent, transposed) parameters."""
    keys = jax.random.split(key, 16)
    p = {}
    if obs_type == "pixels":
        trunk_in, trunk_out = obs_dim, feature_dim
        q_in = feature_dim + action_dim
    else:
        trunk_in, trunk_out = obs_dim + action_dim, hidden_dim
        q_in = hidden_dim

    p["trunk_w"] = _ortho(keys[0], trunk_in, trunk_out)
    p["trunk_b"] = jnp.zeros((1, trunk_out), jnp.float32)
    p["ln_g"] = jnp.ones((1, trunk_out), jnp.float32)
    p["ln_b"] = jnp.zeros((1, trunk_out), jnp.float32)

    for i, q in enumerate(("q1", "q2")):
        p[f"{q}_w1"] = _ortho(keys[1 + 6 * i], q_in, hidden_dim)
        p[f"{q}_b1"] = jnp.zeros((1, hidden_dim), jnp.float32)
        if obs_type == "pixels":
            p[f"{q}_w2"] = _ortho(keys[2 + 6 * i], hidden_dim, hidden_dim)
            p[f"{q}_b2"] = jnp.zeros((1, hidden_dim), jnp.float32)
            p[f"{q}_w3"] = _ortho(keys[3 + 6 * i], hidden_dim, 1)
            p[f"{q}_b3"] = jnp.zeros((1, 1), jnp.float32)
        else:
            p[f"{q}_w2"] = _ortho(keys[2 + 6 * i], hidden_dim, 1)
            p[f"{q}_b2"] = jnp.zeros((1, 1), jnp.float32)
    return p


def _bias_slab(rows):
    """Pack row vectors (different widths) into one (n_rows, C) VMEM slab."""
    c = max(r.shape[-1] for r in rows)
    return jnp.stack([jnp.pad(r.reshape(-1), (0, c - r.shape[-1])) for r in rows])


def fuse_params_states(p, obs_dim):
    return {
        "w_obs": p["trunk_w"][:obs_dim],
        "w_act": p["trunk_w"][obs_dim:],
        "qw1": jnp.concatenate([p["q1_w1"], p["q2_w1"]], axis=1),           # (H, 2H)
        "qw2": jax.scipy.linalg.block_diag(p["q1_w2"], p["q2_w2"]),         # (2H, 2)
        "bias": _bias_slab([
            p["trunk_b"], p["ln_g"], p["ln_b"],
            jnp.concatenate([p["q1_b1"], p["q2_b1"]], axis=1),
            jnp.concatenate([p["q1_b2"], p["q2_b2"]], axis=1)]),
    }


def fuse_params_pixels(p, feature_dim):
    return {
        "wt": p["trunk_w"],                                                 # (obs_dim, F)
        "qwf": jnp.concatenate([p["q1_w1"][:feature_dim],
                                p["q2_w1"][:feature_dim]], axis=1),         # (F, 2H)
        "qwa": jnp.concatenate([p["q1_w1"][feature_dim:],
                                p["q2_w1"][feature_dim:]], axis=1),         # (A, 2H)
        "qw2": jax.scipy.linalg.block_diag(p["q1_w2"], p["q2_w2"]),         # (2H, 2H)
        "qw3": jax.scipy.linalg.block_diag(p["q1_w3"], p["q2_w3"]),         # (2H, 2)
        "bias": _bias_slab([
            p["trunk_b"], p["ln_g"], p["ln_b"],
            jnp.concatenate([p["q1_b1"], p["q2_b1"]], axis=1),
            jnp.concatenate([p["q1_b2"], p["q2_b2"]], axis=1),
            jnp.concatenate([p["q1_b3"], p["q2_b3"]], axis=1)]),
    }


# ------------------------------ pure-JAX reference ---------------------------
def _ref_ln_tanh(x, g, b):
    mu = x.mean(-1, keepdims=True)
    var = ((x - mu) ** 2).mean(-1, keepdims=True)
    return jnp.tanh((x - mu) / jnp.sqrt(var + LN_EPS) * g + b)


def ref_forward(obs, action, p, obs_type):
    if obs_type == "pixels":
        h = _ref_ln_tanh(obs @ p["trunk_w"] + p["trunk_b"], p["ln_g"], p["ln_b"])
        h = jnp.concatenate([h, action], -1)
        outs = []
        for q in ("q1", "q2"):
            z = jnp.maximum(h @ p[f"{q}_w1"] + p[f"{q}_b1"], 0.0)
            z = jnp.maximum(z @ p[f"{q}_w2"] + p[f"{q}_b2"], 0.0)
            outs.append(z @ p[f"{q}_w3"] + p[f"{q}_b3"])
        return tuple(outs)
    else:
        x = jnp.concatenate([obs, action], -1)
        h = _ref_ln_tanh(x @ p["trunk_w"] + p["trunk_b"], p["ln_g"], p["ln_b"])
        outs = []
        for q in ("q1", "q2"):
            z = jnp.maximum(h @ p[f"{q}_w1"] + p[f"{q}_b1"], 0.0)
            outs.append(z @ p[f"{q}_w2"] + p[f"{q}_b2"])
        return tuple(outs)


# ----------------------------------- main ------------------------------------
if __name__ == "__main__":
    key = jax.random.PRNGKey(0)
    B, obs_dim, action_dim, feature_dim, hidden_dim = 4, 24, 6, 16, 32

    k_obs, k_act, k_p1, k_p2, k_big = jax.random.split(key, 5)
    obs = jax.random.normal(k_obs, (B, obs_dim), jnp.float32)
    action = jax.random.normal(k_act, (B, action_dim), jnp.float32)

    # --- obs_type = 'states' branch ---
    ps = init_params(k_p1, "states", obs_dim, action_dim, feature_dim, hidden_dim)
    fs = fuse_params_states(ps, obs_dim)
    q1_s, q2_s = critic_forward_states(obs, action, fs)
    jax.block_until_ready((q1_s, q2_s))
    r1_s, r2_s = ref_forward(obs, action, ps, "states")
    assert jnp.allclose(q1_s, r1_s, atol=1e-4), "states q1 mismatch"
    assert jnp.allclose(q2_s, r2_s, atol=1e-4), "states q2 mismatch"

    # --- obs_type = 'pixels' branch ---
    pp = init_params(k_p2, "pixels", obs_dim, action_dim, feature_dim, hidden_dim)
    fp = fuse_params_pixels(pp, feature_dim)
    q1_p, q2_p = critic_forward_pixels(obs, action, fp)
    jax.block_until_ready((q1_p, q2_p))
    r1_p, r2_p = ref_forward(obs, action, pp, "pixels")
    assert jnp.allclose(q1_p, r1_p, atol=1e-4), "pixels q1 mismatch"
    assert jnp.allclose(q2_p, r2_p, atol=1e-4), "pixels q2 mismatch"

    # --- large-batch path: exercises the batch grid (2 grid steps, TILE_B=256) ---
    Bbig = 512
    obs_b = jax.random.normal(k_big, (Bbig, obs_dim), jnp.float32)
    act_b = jax.random.normal(jax.random.fold_in(k_big, 1), (Bbig, action_dim), jnp.float32)
    q1_b, q2_b = critic_forward_states(obs_b, act_b, fs)
    jax.block_until_ready((q1_b, q2_b))
    r1_b, r2_b = ref_forward(obs_b, act_b, ps, "states")
    assert jnp.allclose(q1_b, r1_b, atol=1e-4), "gridded states q1 mismatch"
    assert jnp.allclose(q2_b, r2_b, atol=1e-4), "gridded states q2 mismatch"

    print("KERNEL_OK")
</pallas_src>

<mosaic_0001>
module attributes {stable_mosaic.version = 11 : i64} {
  func.func @critic_states_kernel(%arg0: i32, %arg1: memref<4x24xf32, #tpu.memory_space<vmem>>, %arg2: memref<4x6xf32, #tpu.memory_space<vmem>>, %arg3: memref<24x32xf32, #tpu.memory_space<vmem>>, %arg4: memref<6x32xf32, #tpu.memory_space<vmem>>, %arg5: memref<32x64xf32, #tpu.memory_space<vmem>>, %arg6: memref<64x2xf32, #tpu.memory_space<vmem>>, %arg7: memref<5x64xf32, #tpu.memory_space<vmem>>, %arg8: memref<4x2xf32, #tpu.memory_space<vmem>>) attributes {dimension_semantics = [#tpu.dimension_semantics<parallel>], iteration_bounds = array<i64: 1>, scalar_prefetch = 0 : i64, scratch_operands = 0 : i64, tpu.core_type = #tpu.core_type<tc>, window_params = [{transform_indices = @transform_0, window_bounds = array<i64: 4, 24>}, {transform_indices = @transform_1, window_bounds = array<i64: 4, 6>}, {pipeline_mode = #tpu.pipeline_mode<synchronous>, transform_indices = @transform_2, window_bounds = array<i64: 24, 32>}, {pipeline_mode = #tpu.pipeline_mode<synchronous>, transform_indices = @transform_3, window_bounds = array<i64: 6, 32>}, {pipeline_mode = #tpu.pipeline_mode<synchronous>, transform_indices = @transform_4, window_bounds = array<i64: 32, 64>}, {pipeline_mode = #tpu.pipeline_mode<synchronous>, transform_indices = @transform_5, window_bounds = array<i64: 64, 2>}, {pipeline_mode = #tpu.pipeline_mode<synchronous>, transform_indices = @transform_6, window_bounds = array<i64: 5, 64>}, {transform_indices = @transform_7, window_bounds = array<i64: 4, 2>}]} {
    %c0 = arith.constant 0 : index
    %c0_0 = arith.constant 0 : index
    %0 = vector.load %arg7[%c0, %c0_0] : memref<5x64xf32, #tpu.memory_space<vmem>>, vector<1x32xf32>
    %c1 = arith.constant 1 : index
    %c0_1 = arith.constant 0 : index
    %1 = vector.load %arg7[%c1, %c0_1] : memref<5x64xf32, #tpu.memory_space<vmem>>, vector<1x32xf32>
    %c2 = arith.constant 2 : index
    %c0_2 = arith.constant 0 : index
    %2 = vector.load %arg7[%c2, %c0_2] : memref<5x64xf32, #tpu.memory_space<vmem>>, vector<1x32xf32>
    %c3 = arith.constant 3 : index
    %c0_3 = arith.constant 0 : index
    %3 = vector.load %arg7[%c3, %c0_3] : memref<5x64xf32, #tpu.memory_space<vmem>>, vector<1x64xf32>
    %c4 = arith.constant 4 : index
    %c0_4 = arith.constant 0 : index
    %4 = vector.load %arg7[%c4, %c0_4] : memref<5x64xf32, #tpu.memory_space<vmem>>, vector<1x2xf32>
    %c0_5 = arith.constant 0 : index
    %c0_6 = arith.constant 0 : index
    %5 = vector.load %arg1[%c0_5, %c0_6] : memref<4x24xf32, #tpu.memory_space<vmem>>, vector<4x24xf32>
    %c0_7 = arith.constant 0 : index
    %c0_8 = arith.constant 0 : index
    %6 = vector.load %arg3[%c0_7, %c0_8] : memref<24x32xf32, #tpu.memory_space<vmem>>, vector<24x32xf32>
    %cst = arith.constant dense<0.000000e+00> : vector<4x32xf32>
    %7 = tpu.matmul %5, %6, %cst {dimension_numbers = #tpu.dot_dimension_numbers<[1], [0], [0], [1], [0, 0, 1, 1], [], []>} : vector<4x24xf32>, vector<24x32xf32>, vector<4x32xf32> -> vector<4x32xf32>
    %c0_9 = arith.constant 0 : index
    %c0_10 = arith.constant 0 : index
    %8 = vector.load %arg2[%c0_9, %c0_10] : memref<4x6xf32, #tpu.memory_space<vmem>>, vector<4x6xf32>
    %c0_11 = arith.constant 0 : index
    %c0_12 = arith.constant 0 : index
    %9 = vector.load %arg4[%c0_11, %c0_12] : memref<6x32xf32, #tpu.memory_space<vmem>>, vector<6x32xf32>
    %cst_13 = arith.constant dense<0.000000e+00> : vector<4x32xf32>
    %10 = tpu.matmul %8, %9, %cst_13 {dimension_numbers = #tpu.dot_dimension_numbers<[1], [0], [0], [1], [0, 0, 1, 1], [], []>} : vector<4x6xf32>, vector<6x32xf32>, vector<4x32xf32> -> vector<4x32xf32>
    %11 = arith.addf %7, %10 : vector<4x32xf32>
    %12 = vector.broadcast %0 : vector<1x32xf32> to vector<4x32xf32>
    %13 = arith.addf %11, %12 : vector<4x32xf32>
    %cst_14 = arith.constant dense<0.000000e+00> : vector<4xf32>
    %14 = vector.multi_reduction <add>, %13, %cst_14 [1] : vector<4x32xf32> to vector<4xf32>
    %15 = vector.shape_cast %14 : vector<4xf32> to vector<4x1xf32>
    %cst_15 = arith.constant 3.200000e+01 : f32
    %16 = vector.broadcast %cst_15 : f32 to vector<4x1xf32>
    %17 = arith.divf %15, %16 : vector<4x1xf32>
    %18 = vector.broadcast %17 : vector<4x1xf32> to vector<4x32xf32>
    %19 = arith.subf %13, %18 : vector<4x32xf32>
    %20 = arith.mulf %19, %19 : vector<4x32xf32>
    %cst_16 = arith.constant dense<0.000000e+00> : vector<4xf32>
    %21 = vector.multi_reduction <add>, %20, %cst_16 [1] : vector<4x32xf32> to vector<4xf32>
    %22 = vector.shape_cast %21 : vector<4xf32> to vector<4x1xf32>
    %cst_17 = arith.constant 3.200000e+01 : f32
    %23 = vector.broadcast %cst_17 : f32 to vector<4x1xf32>
    %24 = arith.divf %22, %23 : vector<4x1xf32>
    %25 = vector.broadcast %17 : vector<4x1xf32> to vector<4x32xf32>
    %26 = arith.subf %13, %25 : vector<4x32xf32>
    %cst_18 = arith.constant 9.99999974E-6 : f32
    %27 = vector.broadcast %cst_18 : f32 to vector<4x1xf32>
    %28 = arith.addf %24, %27 : vector<4x1xf32>
    %29 = math.rsqrt %28 : vector<4x1xf32>
    %30 = vector.broadcast %29 : vector<4x1xf32> to vector<4x32xf32>
    %31 = arith.mulf %26, %30 : vector<4x32xf32>
    %32 = vector.broadcast %1 : vector<1x32xf32> to vector<4x32xf32>
    %33 = arith.mulf %31, %32 : vector<4x32xf32>
    %34 = vector.broadcast %2 : vector<1x32xf32> to vector<4x32xf32>
    %35 = arith.addf %33, %34 : vector<4x32xf32>
    %36 = math.tanh %35 : vector<4x32xf32>
    %c0_19 = arith.constant 0 : index
    %c0_20 = arith.constant 0 : index
    %37 = vector.load %arg5[%c0_19, %c0_20] : memref<32x64xf32, #tpu.memory_space<vmem>>, vector<32x64xf32>
    %cst_21 = arith.constant dense<0.000000e+00> : vector<4x64xf32>
    %38 = tpu.matmul %36, %37, %cst_21 {dimension_numbers = #tpu.dot_dimension_numbers<[1], [0], [0], [1], [0, 0, 1, 1], [], []>} : vector<4x32xf32>, vector<32x64xf32>, vector<4x64xf32> -> vector<4x64xf32>
    %39 = vector.broadcast %3 : vector<1x64xf32> to vector<4x64xf32>
    %40 = arith.addf %38, %39 : vector<4x64xf32>
    %cst_22 = arith.constant 0.000000e+00 : f32
    %41 = vector.broadcast %cst_22 : f32 to vector<4x64xf32>
    %42 = arith.maximumf %40, %41 : vector<4x64xf32>
    %c0_23 = arith.constant 0 : index
    %c0_24 = arith.constant 0 : index
    %43 = vector.load %arg6[%c0_23, %c0_24] : memref<64x2xf32, #tpu.memory_space<vmem>>, vector<64x2xf32>
    %cst_25 = arith.constant dense<0.000000e+00> : vector<4x2xf32>
    %44 = tpu.matmul %42, %43, %cst_25 {dimension_numbers = #tpu.dot_dimension_numbers<[1], [0], [0], [1], [0, 0, 1, 1], [], []>} : vector<4x64xf32>, vector<64x2xf32>, vector<4x2xf32> -> vector<4x2xf32>
    %45 = vector.broadcast %4 : vector<1x2xf32> to vector<4x2xf32>
    %46 = arith.addf %44, %45 : vector<4x2xf32>
    %c0_26 = arith.constant 0 : index
    %c0_27 = arith.constant 0 : index
    %47 = vector.load %arg8[%c0_26, %c0_27] : memref<4x2xf32, #tpu.memory_space<vmem>>, vector<4x2xf32>
    tpu.vector_store %arg8[%c0_26, %c0_27], %46 {strides = array<i32>} : memref<4x2xf32, #tpu.memory_space<vmem>>, vector<4x2xf32>,
    return
  }
  func.func @transform_0(%arg0: i32) -> (i32, i32) {
    %c0_i32 = arith.constant 0 : i32
    %c0_i32_0 = arith.constant 0 : i32
    return %arg0, %c0_i32 : i32, i32
  }
  func.func @transform_1(%arg0: i32) -> (i32, i32) {
    %c0_i32 = arith.constant 0 : i32
    %c0_i32_0 = arith.constant 0 : i32
    return %arg0, %c0_i32 : i32, i32
  }
  func.func @transform_2(%arg0: i32) -> (i32, i32) {
    %c0_i32 = arith.constant 0 : i32
    %c0_i32_0 = arith.constant 0 : i32
    %c0_i32_1 = arith.constant 0 : i32
    return %c0_i32, %c0_i32_0 : i32, i32
  }
  func.func @transform_3(%arg0: i32) -> (i32, i32) {
    %c0_i32 = arith.constant 0 : i32
    %c0_i32_0 = arith.constant 0 : i32
    %c0_i32_1 = arith.constant 0 : i32
    return %c0_i32, %c0_i32_0 : i32, i32
  }
  func.func @transform_4(%arg0: i32) -> (i32, i32) {
    %c0_i32 = arith.constant 0 : i32
    %c0_i32_0 = arith.constant 0 : i32
    %c0_i32_1 = arith.constant 0 : i32
    return %c0_i32, %c0_i32_0 : i32, i32
  }
  func.func @transform_5(%arg0: i32) -> (i32, i32) {
    %c0_i32 = arith.constant 0 : i32
    %c0_i32_0 = arith.constant 0 : i32
    %c0_i32_1 = arith.constant 0 : i32
    return %c0_i32, %c0_i32_0 : i32, i32
  }
  func.func @transform_6(%arg0: i32) -> (i32, i32) {
    %c0_i32 = arith.constant 0 : i32
    %c0_i32_0 = arith.constant 0 : i32
    %c0_i32_1 = arith.constant 0 : i32
    return %c0_i32, %c0_i32_0 : i32, i32
  }
  func.func @transform_7(%arg0: i32) -> (i32, i32) {
    %c0_i32 = arith.constant 0 : i32
    %c0_i32_0 = arith.constant 0 : i32
    return %arg0, %c0_i32 : i32, i32
  }
}

</mosaic_0001>

<bundles_post_ra>
// kernel: tpu_custom_call.1
= control target key start
LH: loop header
LB: loop body
LE: loop exit
PB: predicated region body
PF: predicated region fallthrough
CT: control target
= control target key end

     0   :  { %12 = vsyncpa [#allocation3], 0  ;;  %s712_s0 = inlined_call_operand.hbm [shape: f32[4,24], index: 0, kind: input, shape index: {}]   ;;  %s713_s1 = inlined_call_operand.hbm [shape: f32[4,6], index: 1, kind: input, shape index: {}]   ;;  %s714_s2 = inlined_call_operand.vmem [shape: f32[24,32], index: 2, kind: input, shape index: {}]   ;;  %s715_s3 = inlined_call_operand.vmem [shape: f32[6,32], index: 3, kind: input, shape index: {}]   ;;  %s716_s4 = inlined_call_operand.vmem [shape: f32[32,64], index: 4, kind: input, shape index: {}]   ;;  %s717_s5 = inlined_call_operand.vmem [shape: f32[64,2], index: 5, kind: input, shape index: {}]   ;;  %s718_s6 = inlined_call_operand.vmem [shape: f32[5,64], index: 6, kind: input, shape index: {}]   ;;  %s719_s7 = inlined_call_operand.vmem [shape: f32[4,2], index: 7, kind: output, shape index: {}]  }
   0x1   :  { %13 = vsyncpa [#allocation5], 0  ;;  %s573_s24 = smov [#allocation2]   ;;  %s574_s26 = smov [#allocation4]  }
   0x2   :  { %s20_s25 = sshll.u32 %s573_s24, 4  ;;  %s30_s27 = sshll.u32 %s574_s26, 4  ;;  %s21_s25 = int_to_ptr.vmem [resolvable:$true] %s20_s25  ;;  %s31_s27 = int_to_ptr.vmem [resolvable:$true] %s30_s27 }
   0x3   :  { %s525_s30 = scalar_lea.hbm %s712_s0, 64 }
   0x4   :  { %p526_p0 = scmp.ne.s32.totalorder %s712_s0, %s525_s30  ;;  %p529_p1 = scmp.lt.u32.totalorder %s525_s30, %s712_s0 }
   0x6   :  { %p531_p2 = pnand %p529_p1, %p526_p0 }
   0x8   :  { %534 = shalt.err (!%p531_p2)
}
   0x9   :  { %s535_s12 = scalar_lea.vmem %s21_s25, 64  ;;  %p540_p4 = scmp.lt.s32.totalorder %s21_s25, %s21_s25 }
   0xa   :  { %p536_p3 = scmp.ne.s32.totalorder %s21_s25, %s535_s12  ;;  %p541_p5 = scmp.lt.s32.totalorder %s535_s12, %s535_s12 }
   0xc   :  { %p542_p6 = por %p541_p5, %p540_p4 }
   0xe   :  { %p543_p7 = pnand %p542_p6, %p536_p3 }
  0x10   :  { %546 = shalt.err (!%p543_p7)
}
  0x11   :  { %23 = dma.hbm_to_vmem [thread:$0]  %s712_s0, 64, %s21_s25, [#allocation3]  }
  0x12   :  { %s547_s17 = scalar_lea.hbm %s713_s1, 64 }
  0x13   :  { %p548_p8 = scmp.ne.s32.totalorder %s713_s1, %s547_s17  ;;  %p551_p9 = scmp.lt.u32.totalorder %s547_s17, %s713_s1 }
  0x15   :  { %p553_p10 = pnand %p551_p9, %p548_p8 }
  0x17   :  { %556 = shalt.err (!%p553_p10)
}
  0x18   :  { %s557_s22 = scalar_lea.vmem %s31_s27, 64  ;;  %p562_p12 = scmp.lt.s32.totalorder %s31_s27, %s31_s27 }
  0x19   :  { %p558_p11 = scmp.ne.s32.totalorder %s31_s27, %s557_s22  ;;  %p563_p13 = scmp.lt.s32.totalorder %s557_s22, %s557_s22 }
  0x1b   :  { %p564_p0 = por %p563_p13, %p562_p12 }
  0x1d   :  { %p565_p1 = pnand %p564_p0, %p558_p11 }
  0x1f   :  { %568 = shalt.err (!%p565_p1)
}
  0x20   :  { %33 = dma.hbm_to_vmem [thread:$0]  %s713_s1, 64, %s31_s27, [#allocation5]  }
  0x21   :  { %569 = dma.done.wait [#allocation3], 64  }
  0x22   :  { %570 = vsyncadd [#allocation3], 4294967232 }
  0x23   :  { %571 = dma.done.wait [#allocation5], 64  }
  0x24   :  { %572 = vsyncadd [#allocation5], 4294967232  ;;  %v575_v0 = vmov 0.0   ;;  %vm576_vm0 = vmmov 0   ;;  %v577_v1 = vmov 0.0|0.0   ;;  %vm65_vm1 = vcmask 1045504  }
  0x25   :  { %451 = vmatprep.subr.mxu0 %v575_v0  ;;  %453 = vmatprep.mubr.msk.f32.mxu0 %vm576_vm0, %v575_v0  ;;  %vm61_vm2 = vcmask 48128   ;;  %v60_v2 = vld [vmem:[%s715_s3] sm:$0x3f]  ;;  %v57_v5 = vld [vmem:[%s714_s2 + $0x8] sm:$0xff]  ;;  %v58_v7 = vld [vmem:[%s714_s2 + $0x10] sm:$0xff]  ;;  %vm139_vm3 = vcmask 195584  }
  0x26   :  { %504 = vmatprep.subr.bf16.mxu1 %v577_v1  ;;  %492 = vmatprep.mubr.msk.f32.mxu1 %vm576_vm0, %v575_v0  ;;  %v59_v3 = vld [vmem:[#allocation4] sm:$0xf]  ;;  %v55_v8 = vld [vmem:[#allocation2] sm:$0xf]  ;;  %vm218_vm4 = vcmask 257024   ;;  %v245_v23 = vld [vmem:[%s716_s4 + $0x8] sm:$0xff] }
  0x27   :  { %v56_v4 = vld [vmem:[%s714_s2] sm:$0xff]  ;;  %452 = vmatpush3.msk.msra.mxu0 %vm65_vm1, %v60_v2  ;;  %v246_v24 = vld [vmem:[%s716_s4 + $0x10] sm:$0xff]  ;;  %v247_v26 = vld [vmem:[%s716_s4 + $0x18] sm:$0xff]  ;;  %vm252_vm5 = vcmask 261120   ;;  %vm339_vm6 = vcmask 523264   ;;  %vm413_vm7 = vcmask 11264  }
  0x28   :  { %454 = vmatmul.mubr.msk.f32.vlgmr.msra.gmra.mrb[0].mxu0 %vm61_vm2, %v59_v3  ;;  %495 = vmatprep.subr.bf16.mxu0 %v577_v1  ;;  %v496_v6 = vpack.c.bf16 %v57_v5, %v56_v4  ;;  %v424_v12 = vld [vmem:[%s718_s6] ss:$0 sm:$0xff]  ;;  %v502_v27 = vpack.c.bf16 %v247_v26, %v246_v24  ;;  %v328_v29 = vld [vmem:[%s717_s5 + $0x8] sm:$0xff]  ;;  %v329_v30 = vld [vmem:[%s717_s5 + $0x10] sm:$0xff] }
  0x29   :  { %462 = vmatprep.mubr.msk.f32.mxu0 %vm576_vm0, %v575_v0  ;;  %v244_v22 = vld [vmem:[%s716_s4] sm:$0xff]  ;;  %v330_v32 = vld [vmem:[%s717_s5 + $0x18] sm:$0xff]  ;;  %v332_v35 = vld [vmem:[%s717_s5 + $0x28] sm:$0xff] }
  0x2a   :  { %497 = vmatpush3.bf16.msra.mxu0 %v496_v6  ;;  %v499_v25 = vpack.c.bf16 %v245_v23, %v244_v22  ;;  %v327_v28 = vld [vmem:[%s717_s5] sm:$0xff]  ;;  %v508_v33 = vpack.c.bf16 %v330_v32, %v329_v30  ;;  %v333_v47 = vld [vmem:[%s717_s5 + $0x30] sm:$0xff]  ;;  %v334_v48 = vld [vmem:[%s717_s5 + $0x38] sm:$0xff] }
  0x2b   :  { %460 = vmatprep.subr.mxu0 %v575_v0  ;;  %v505_v31 = vpack.c.bf16 %v328_v29, %v327_v28  ;;  %v331_v34 = vld [vmem:[%s717_s5 + $0x20] sm:$0xff]  ;;  %v514_v49 = vpack.c.bf16 %v334_v48, %v333_v47 }
  0x2c   :  { %v511_v36 = vpack.c.bf16 %v332_v35, %v331_v34  ;;  %v425_v41 = vld [vmem:[%s718_s6 + $0x1] ss:$0 sm:$0xff]  ;;  %v426_v43 = vld [vmem:[%s718_s6 + $0x2] ss:$0 sm:$0xff]  ;;  %v427_v50 = vld [vmem:[%s718_s6 + $0x3] ss:$0 sm:$0xff] }
  0x2d   :  { %506 = vmatpush3.bf16.msra.mxu1 %v505_v31  ;;  %v429_v55 = vld [vmem:[%s718_s6 + $0x4] ss:$0 sm:$0xff] }
  0x2e   :  { %461 = vmatpush3.msra.mxu0 %v58_v7  ;;  %507 = vmatprep.subr.bf16.mxu1 %v577_v1 }
  0x2f   :  { %463 = vmatmul.mubr.msk.f32.vlgmr.msra.gmra.mrb[2].mxu0 %vm139_vm3, %v55_v8  ;;  %498 = vmatprep.subr.bf16.mxu0 %v577_v1 }
  0x30   :  { %473 = vmatprep.mubr.msk.f32.mxu0 %vm576_vm0, %v575_v0  ;;  %500 = vmatpush3.bf16.msra.mxu0 %v499_v25 }
  0x31   :  { %501 = vmatprep.subr.bf16.mxu0 %v577_v1  ;;  %509 = vmatpush3.bf16.msra.mxu1 %v508_v33 }
  0x32   :  { %510 = vmatprep.subr.bf16.mxu1 %v577_v1 }
  0x34   :  { %503 = vmatpush3.bf16.msra.mxu0 %v502_v27 }
  0x35   :  { %512 = vmatpush3.bf16.msra.mxu1 %v511_v36 }
  0x36   :  { %513 = vmatprep.subr.bf16.mxu1 %v577_v1 }
  0x39   :  { %515 = vmatpush3.bf16.msra.mxu1 %v514_v49 }
  0xfb   :  { %v135_v9 = vpop.f32.mrb[0].mxu0 }
  0xfc   :  { %v455_v10 = vpop.f32.mrb[1].mxu0 }
 0x102   :  { %v209_v11 = vpop.f32.mrb[2].mxu0 }
 0x103   :  { %v210_v13 = vadd.f32 %v209_v11, %v135_v9  ;;  %v464_v14 = vpop.f32.mrb[3].mxu0 }
 0x105   :  { %v217_v15 = vadd.f32 %v424_v12, %v210_v13 }
 0x107   :  { %v219_v16 = vsel %vm218_vm4, %v217_v15, 0.0 }
 0x108   :  { %220 = vadd.xlane.f32.xlu0 %v219_v16 }
 0x195   :  { %v221_v17 = vpop.xlane.xlu0 %220 }
 0x196   :  { %v223_v18 = vmul.f32 0.03125, %v221_v17 }
 0x198   :  { %v224_v19 = vsub.f32 %v217_v15, %v223_v18 }
 0x19a   :  { %v225_v20 = vmul.f32 %v224_v19, %v224_v19 }
 0x19c   :  { %v226_v21 = vsel %vm218_vm4, %v225_v20, 0.0 }
 0x19d   :  { %227 = vadd.xlane.f32.xlu0 %v226_v21 }
 0x22a   :  { %v228_v37 = vpop.xlane.xlu0 %227 }
 0x22b   :  { %v229_v38 = vmul.f32 0.03125, %v228_v37 }
 0x22d   :  { %v230_v39 = vadd.f32 1e-05, %v229_v38 }
 0x22f   :  { %521 = vrsqrt.f32 %v230_v39 }
 0x239   :  { %v522_v40 = vpop.eup %521 }
 0x23a   :  { %v232_v42 = vmul.f32 %v522_v40, %v224_v19 }
 0x23c   :  { %v237_v44 = vmul.f32 %v425_v41, %v232_v42 }
 0x23e   :  { %v242_v45 = vadd.f32 %v426_v43, %v237_v44 }
 0x240   :  { %523 = vtanh.f32 %v242_v45 }
 0x24a   :  { %v524_v46 = vpop.eup %523 }
 0x24b   :  { %474 = vmatmul.mubr.msk.f32.vlgmr.msra.gmra.mrb[4].mxu0 %vm252_vm5, %v524_v46 }
 0x31e   :  { %v322_v51 = vpop.f32.mrb[4].mxu0 }
 0x31f   :  { %v323_v52 = vadd.f32 %v427_v50, %v322_v51  ;;  %v475_v53 = vpop.f32.mrb[5].mxu0 }
 0x321   :  { %v326_v54 = vmax.f32 %v323_v52, 0.0 }
 0x323   :  { %493 = vmatmul.mubr.msk.f32.vlgmr.msra.gmra.mrb[0].mxu1 %vm339_vm6, %v326_v54 }
 0x3f6   :  { %v409_v56 = vpop.f32.mrb[0].mxu1 }
 0x3f7   :  { %v410_v57 = vadd.f32 %v429_v55, %v409_v56  ;;  %v494_v58 = vpop.f32.mrb[1].mxu1 }
 0x3f9   :  { %414 = vst.msk [vmem:[%s719_s7] sm:$0xf] %vm413_vm7, %v410_v57 }
 0x3fa   :  { %419 = vsyncpa [#allocation3], 1 }
 0x3fb   :  { %420 = vsyncpa [#allocation5], 1 }

</bundles_post_ra>
